<compile_context>
chip_gen: v6e
topology: v6e:2x2x1
jax: 0.10.0
libtpu: 0.0.40
codegen_flags: <defaults>
</compile_context>

<pallas_src>
import functools

import jax
import jax.numpy as jnp
from jax.experimental import pallas as pl
from jax.experimental.pallas import tpu as pltpu

_LANE = 128                      # vreg lane width
_TARGET_BLOCK_BYTES = 2 << 20    # ~2 MiB input per block: HBM-roofline plateau
_MIN_BLOCK_BYTES = 1 << 20       # floor when shrinking blocks for parallelism
_TARGET_GRID_STEPS = 8           # keep both v7x TensorCores fed
_DEFAULT_SCOPED_VMEM = 32 << 20  # default scoped VMEM limit (v6e/v7x)


def _round_up(x, m):
    return ((x + m - 1) // m) * m


def _round_down(x, m):
    return (x // m) * m


def _cdiv(a, b):
    return (a + b - 1) // b


def _sublane_pack(elem_bytes):
    """Rows per physical sublane tile: 8 (fp32), 16 (bf16), 32 (int8/fp8)."""
    return 8 * max(1, 4 // elem_bytes)


def _pick_tile(total, row_bytes, unit, other_grid_steps):
    """Tile (multiple of `unit`) along an axis of extent `total`.

    row_bytes: physical (padding-aware) input-block bytes per unit step of
    this axis.  Targets ~_TARGET_BLOCK_BYTES per input block, then shrinks —
    never below _MIN_BLOCK_BYTES — so the whole grid keeps ~_TARGET_GRID_STEPS
    steps for cross-TensorCore sharding on v7x.
    """
    total = max(int(total), 1)
    row_bytes = max(int(row_bytes), 1)
    ext = _round_up(total, unit)

    byte_tile = max(unit, min(_round_down(_TARGET_BLOCK_BYTES // row_bytes, unit), ext))
    steps_here = max(1, _cdiv(_TARGET_GRID_STEPS, max(int(other_grid_steps), 1)))
    par_tile = _round_up(_cdiv(total, steps_here), unit)
    floor_tile = max(unit, _round_up(_MIN_BLOCK_BYTES // row_bytes, unit))

    tile = max(min(byte_tile, par_tile), min(byte_tile, floor_tile))
    return int(min(tile, ext))


def _vmem_limit_bytes(in_block_bytes, out_block_bytes, fp32_block_bytes):
    """Real pipelined footprint: 2x double-buffered input + 2x output blocks
    + ~3 live fp32 temporaries, with headroom for Mosaic scratch/semaphores.
    Floored at the default scoped limit so we only ever *raise* the ceiling."""
    need = 2 * in_block_bytes + 2 * out_block_bytes + 3 * fp32_block_bytes
    need = int(need * 1.5) + (2 << 20)
    return max(need, _DEFAULT_SCOPED_VMEM)


# --------------------------------------------------------------------------
# Kernels
# --------------------------------------------------------------------------
def _ln_sublanes_kernel(x_ref, w_ref, b_ref, o_ref, *, eps):
    """channels_first: x_ref (1, C, tile_hw), w/b (C, 1); normalize over C
    (sublane axis). Spatial positions sit on lanes -> lane-dense I/O."""
    x = x_ref[0].astype(jnp.float32)                         # (C, tile_hw)
    u = jnp.mean(x, axis=0, keepdims=True)                   # (1, tile_hw)
    xc = x - u
    var = jnp.mean(xc * xc, axis=0, keepdims=True)           # biased variance
    inv = jax.lax.rsqrt(var + eps)
    o_ref[0] = (xc * inv * w_ref[...].astype(jnp.float32)
                + b_ref[...].astype(jnp.float32)).astype(o_ref.dtype)


def _ln_lanes_kernel(x_ref, w_ref, b_ref, o_ref, *, eps):
    """channels_last fallback: x_ref (tile_n, C), w/b (1, C); normalize over lanes."""
    x = x_ref[...].astype(jnp.float32)
    u = jnp.mean(x, axis=-1, keepdims=True)
    xc = x - u
    var = jnp.mean(xc * xc, axis=-1, keepdims=True)          # biased variance
    inv = jax.lax.rsqrt(var + eps)
    o_ref[...] = (xc * inv * w_ref[...].astype(jnp.float32)
                  + b_ref[...].astype(jnp.float32)).astype(o_ref.dtype)


def _ln_lane_packed_kernel(x_ref, w_ref, b_ref, o_ref, *, eps, c):
    """channels_last, C < 128 and 128 % C == 0: each block row holds 128//c
    consecutive logical rows packed on the 128-lane axis; each c-wide lane
    segment is normalized independently, so loads/stores stay full lane width.
    Per-segment sums use a block-diagonal averaging matmul (otherwise-idle MXU).
    """
    x = x_ref[...].astype(jnp.float32)                       # (tile_m, 128)
    K = x.shape[-1]
    ri = jax.lax.broadcasted_iota(jnp.int32, (K, K), 0) // c
    ci = jax.lax.broadcasted_iota(jnp.int32, (K, K), 1) // c
    seg = jnp.where(ri == ci, jnp.float32(1.0 / c), jnp.float32(0.0))
    mm = functools.partial(jnp.dot, preferred_element_type=jnp.float32,
                           precision=jax.lax.Precision.HIGHEST)
    u = mm(x, seg)                                           # per-lane segment mean
    xc = x - u
    var = mm(xc * xc, seg)                                   # biased segment variance
    inv = jax.lax.rsqrt(var + eps)
    o_ref[...] = (xc * inv * w_ref[...].astype(jnp.float32)
                  + b_ref[...].astype(jnp.float32)).astype(o_ref.dtype)


# --------------------------------------------------------------------------
# Wrappers
# --------------------------------------------------------------------------
def _layernorm_channels_first(x, weight, bias, eps):
    b, c, h, w = x.shape
    hw = h * w
    x3d = x.reshape(b, c, hw)                                # free NCHW view
    eb = jnp.dtype(x.dtype).itemsize

    c_phys = _round_up(c, _sublane_pack(eb))                 # sublane-padded C
    tile_hw = _pick_tile(hw, c_phys * eb, _LANE, other_grid_steps=b)
    grid = (b, _cdiv(hw, tile_hw))                           # ragged tail masked

    blk_bytes = c_phys * tile_hw * eb
    fp32_bytes = _round_up(c, 8) * tile_hw * 4
    vmem_limit = _vmem_limit_bytes(blk_bytes, blk_bytes, fp32_bytes)

    out = pl.pallas_call(
        functools.partial(_ln_sublanes_kernel, eps=eps),
        out_shape=jax.ShapeDtypeStruct((b, c, hw), x.dtype),
        grid_spec=pltpu.PrefetchScalarGridSpec(
            num_scalar_prefetch=0,
            grid=grid,
            in_specs=[
                pl.BlockSpec((1, c, tile_hw), lambda i, j: (i, 0, j)),
                pl.BlockSpec((c, 1), lambda i, j: (0, 0)),
                pl.BlockSpec((c, 1), lambda i, j: (0, 0)),
            ],
            out_specs=pl.BlockSpec((1, c, tile_hw), lambda i, j: (i, 0, j)),
        ),
        compiler_params=pltpu.CompilerParams(
            dimension_semantics=("parallel", "parallel"),
            vmem_limit_bytes=vmem_limit,
        ),
    )(x3d, weight.reshape(c, 1), bias.reshape(c, 1))
    return out.reshape(b, c, h, w)


def _layernorm_channels_last(x, weight, bias, eps):
    orig_shape = x.shape
    c = int(orig_shape[-1])
    x2d = x.reshape(-1, c)                                   # free view
    n = x2d.shape[0]
    eb = jnp.dtype(x.dtype).itemsize
    row_unit = _sublane_pack(eb)

    # Lane-dense path for small C (128 % C == 0 and row count divisible by k).
    if c < _LANE and _LANE % c == 0 and n % (_LANE // c) == 0:
        k = _LANE // c
        try:
            xp = x2d.reshape(n // k, _LANE)                  # free row-major view
            m = xp.shape[0]
            tile_m = _pick_tile(m, _LANE * eb, row_unit, other_grid_steps=1)
            blk_bytes = tile_m * _LANE * eb
            vmem_limit = _vmem_limit_bytes(blk_bytes, blk_bytes, tile_m * _LANE * 4)
            wk = jnp.tile(weight.reshape(1, c), (1, k))
            bk = jnp.tile(bias.reshape(1, c), (1, k))
            out = pl.pallas_call(
                functools.partial(_ln_lane_packed_kernel, eps=eps, c=c),
                out_shape=jax.ShapeDtypeStruct((m, _LANE), x.dtype),
                grid_spec=pltpu.PrefetchScalarGridSpec(
                    num_scalar_prefetch=0,
                    grid=(_cdiv(m, tile_m),),
                    in_specs=[
                        pl.BlockSpec((tile_m, _LANE), lambda i: (i, 0)),
                        pl.BlockSpec((1, _LANE), lambda i: (0, 0)),
                        pl.BlockSpec((1, _LANE), lambda i: (0, 0)),
                    ],
                    out_specs=pl.BlockSpec((tile_m, _LANE), lambda i: (i, 0)),
                ),
                compiler_params=pltpu.CompilerParams(
                    dimension_semantics=("parallel",),
                    vmem_limit_bytes=vmem_limit,
                ),
            )(xp, wk, bk)
            return out.reshape(orig_shape)
        except Exception:
            # Defensive: if the in-kernel MXU dot can't lower on this
            # toolchain, fall back to the (correct) masked-store row path.
            pass

    # Fallback: (tile_n, C) row blocks (masked stores only if C % 128 != 0).
    c_lanes = _round_up(c, _LANE)                            # lane-padded width
    tile_n = _pick_tile(n, c_lanes * eb, row_unit, other_grid_steps=1)
    blk_bytes = tile_n * c_lanes * eb
    vmem_limit = _vmem_limit_bytes(blk_bytes, blk_bytes, tile_n * c_lanes * 4)
    out = pl.pallas_call(
        functools.partial(_ln_lanes_kernel, eps=eps),
        out_shape=jax.ShapeDtypeStruct((n, c), x.dtype),
        grid_spec=pltpu.PrefetchScalarGridSpec(
            num_scalar_prefetch=0,
            grid=(_cdiv(n, tile_n),),
            in_specs=[
                pl.BlockSpec((tile_n, c), lambda i: (i, 0)),
                pl.BlockSpec((1, c), lambda i: (0, 0)),
                pl.BlockSpec((1, c), lambda i: (0, 0)),
            ],
            out_specs=pl.BlockSpec((tile_n, c), lambda i: (i, 0)),
        ),
        compiler_params=pltpu.CompilerParams(
            dimension_semantics=("parallel",),
            vmem_limit_bytes=vmem_limit,
        ),
    )(x2d, weight.reshape(1, c), bias.reshape(1, c))
    return out.reshape(orig_shape)


def layer_norm(x, weight, bias, eps=1e-6, data_format="channels_first"):
    """Matches SSGNet LayerNorm.forward.

    channels_first: x is (B, C, H, W); normalize over C; per-channel affine.
    channels_last : x is (..., C); normalize over the last dim; per-channel affine.
    """
    if data_format not in ("channels_last", "channels_first"):
        raise NotImplementedError
    if data_format == "channels_first":
        return _layernorm_channels_first(x, weight, bias, eps)
    return _layernorm_channels_last(x, weight, bias, eps)


if __name__ == "__main__":
    key = jax.random.PRNGKey(0)
    kx, kw, kb, kx2, kx3, kx4 = jax.random.split(key, 6)
    eps = 1e-6

    def ref_channels_first(x, w, b):
        u = jnp.mean(x, axis=1, keepdims=True)
        s = jnp.mean((x - u) ** 2, axis=1, keepdims=True)
        return (w[None, :, None, None] * ((x - u) / jnp.sqrt(s + eps))
                + b[None, :, None, None])

    def ref_channels_last(x, w, b):
        u = jnp.mean(x, axis=-1, keepdims=True)
        s = jnp.mean((x - u) ** 2, axis=-1, keepdims=True)
        return ((x - u) / jnp.sqrt(s + eps)) * w + b

    # --- channels_first (NCHW), the module's default -----------------------
    B, C, H, W = 2, 4, 16, 16
    x = jax.random.normal(kx, (B, C, H, W), dtype=jnp.float32)
    weight = jnp.ones((C,), jnp.float32) + 0.1 * jax.random.normal(kw, (C,), jnp.float32)
    bias = 0.1 * jax.random.normal(kb, (C,), jnp.float32)
    out = jax.block_until_ready(
        layer_norm(x, weight, bias, eps=eps, data_format="channels_first"))
    assert out.shape == x.shape and out.dtype == x.dtype
    assert jnp.allclose(out, ref_channels_first(x, weight, bias), atol=1e-5, rtol=1e-5)

    # --- channels_first, H*W not a multiple of 128 (masked lane tail) ------
    x2 = jax.random.normal(kx2, (2, 4, 10, 10), dtype=jnp.float32)
    out2 = jax.block_until_ready(
        layer_norm(x2, weight, bias, eps=eps, data_format="channels_first"))
    assert jnp.allclose(out2, ref_channels_first(x2, weight, bias), atol=1e-5, rtol=1e-5)

    # --- channels_last (NHWC), lane-packed path (C=32 divides 128) ---------
    C3 = 32
    x3 = jax.random.normal(kx3, (2, 8, 8, C3), dtype=jnp.float32)
    w3 = jnp.ones((C3,), jnp.float32) + 0.1 * jax.random.normal(kw, (C3,), jnp.float32)
    b3 = 0.1 * jax.random.normal(kb, (C3,), jnp.float32)
    out3 = jax.block_until_ready(
        layer_norm(x3, w3, b3, eps=eps, data_format="channels_last"))
    # Segment mean/var run through the MXU (precision=HIGHEST, ~1e-6 error);
    # keep margin in case the toolchain picks a lower-precision pass count.
    assert jnp.allclose(out3, ref_channels_last(x3, w3, b3), atol=1e-3, rtol=1e-3)

    # --- channels_last, fallback row path (rows not divisible by 128//C) ---
    x4 = jax.random.normal(kx4, (2, 7, 7, C3), dtype=jnp.float32)   # n=98 -> fallback
    out4 = jax.block_until_ready(
        layer_norm(x4, w3, b3, eps=eps, data_format="channels_last"))
    assert jnp.allclose(out4, ref_channels_last(x4, w3, b3), atol=1e-5, rtol=1e-5)

    print("KERNEL_OK")
</pallas_src>

<mosaic_0001>
module attributes {stable_mosaic.version = 11 : i64} {
  func.func @_ln_sublanes_kernel(%arg0: i32, %arg1: i32, %arg2: memref<1x4x256xf32, #tpu.memory_space<vmem>>, %arg3: memref<4x1xf32, #tpu.memory_space<vmem>>, %arg4: memref<4x1xf32, #tpu.memory_space<vmem>>, %arg5: memref<1x4x256xf32, #tpu.memory_space<vmem>>) attributes {dimension_semantics = [#tpu.dimension_semantics<parallel>, #tpu.dimension_semantics<parallel>], iteration_bounds = array<i64: 2, 1>, scalar_prefetch = 0 : i64, scratch_operands = 0 : i64, tpu.core_type = #tpu.core_type<tc>, window_params = [{transform_indices = @transform_0, window_bounds = array<i64: 1, 4, 256>}, {pipeline_mode = #tpu.pipeline_mode<synchronous>, transform_indices = @transform_1, window_bounds = array<i64: 4, 1>}, {pipeline_mode = #tpu.pipeline_mode<synchronous>, transform_indices = @transform_2, window_bounds = array<i64: 4, 1>}, {transform_indices = @transform_3, window_bounds = array<i64: 1, 4, 256>}]} {
    %c0 = arith.constant 0 : index
    %c0_0 = arith.constant 0 : index
    %c0_1 = arith.constant 0 : index
    %0 = vector.load %arg2[%c0, %c0_0, %c0_1] : memref<1x4x256xf32, #tpu.memory_space<vmem>>, vector<1x4x256xf32>
    %1 = vector.shape_cast %0 : vector<1x4x256xf32> to vector<4x256xf32>
    %cst = arith.constant dense<0.000000e+00> : vector<256xf32>
    %2 = vector.multi_reduction <add>, %1, %cst [0] : vector<4x256xf32> to vector<256xf32>
    %3 = vector.shape_cast %2 : vector<256xf32> to vector<1x256xf32>
    %cst_2 = arith.constant 4.000000e+00 : f32
    %4 = vector.broadcast %cst_2 : f32 to vector<1x256xf32>
    %5 = arith.divf %3, %4 : vector<1x256xf32>
    %6 = vector.broadcast %5 : vector<1x256xf32> to vector<4x256xf32>
    %7 = arith.subf %1, %6 : vector<4x256xf32>
    %8 = arith.mulf %7, %7 : vector<4x256xf32>
    %cst_3 = arith.constant dense<0.000000e+00> : vector<256xf32>
    %9 = vector.multi_reduction <add>, %8, %cst_3 [0] : vector<4x256xf32> to vector<256xf32>
    %10 = vector.shape_cast %9 : vector<256xf32> to vector<1x256xf32>
    %cst_4 = arith.constant 4.000000e+00 : f32
    %11 = vector.broadcast %cst_4 : f32 to vector<1x256xf32>
    %12 = arith.divf %10, %11 : vector<1x256xf32>
    %cst_5 = arith.constant 9.99999997E-7 : f32
    %13 = vector.broadcast %cst_5 : f32 to vector<1x256xf32>
    %14 = arith.addf %12, %13 : vector<1x256xf32>
    %15 = math.rsqrt %14 : vector<1x256xf32>
    %16 = vector.broadcast %15 : vector<1x256xf32> to vector<4x256xf32>
    %17 = arith.mulf %7, %16 : vector<4x256xf32>
    %c0_6 = arith.constant 0 : index
    %c0_7 = arith.constant 0 : index
    %18 = vector.load %arg3[%c0_6, %c0_7] : memref<4x1xf32, #tpu.memory_space<vmem>>, vector<4x1xf32>
    %19 = vector.broadcast %18 : vector<4x1xf32> to vector<4x256xf32>
    %20 = arith.mulf %17, %19 : vector<4x256xf32>
    %c0_8 = arith.constant 0 : index
    %c0_9 = arith.constant 0 : index
    %21 = vector.load %arg4[%c0_8, %c0_9] : memref<4x1xf32, #tpu.memory_space<vmem>>, vector<4x1xf32>
    %22 = vector.broadcast %21 : vector<4x1xf32> to vector<4x256xf32>
    %23 = arith.addf %20, %22 : vector<4x256xf32>
    %c0_10 = arith.constant 0 : index
    %c0_11 = arith.constant 0 : index
    %c0_12 = arith.constant 0 : index
    %24 = vector.load %arg5[%c0_10, %c0_11, %c0_12] : memref<1x4x256xf32, #tpu.memory_space<vmem>>, vector<1x4x256xf32>
    %25 = vector.shape_cast %24 : vector<1x4x256xf32> to vector<4x256xf32>
    %26 = vector.shape_cast %23 : vector<4x256xf32> to vector<1x4x256xf32>
    tpu.vector_store %arg5[%c0_10, %c0_11, %c0_12], %26 {strides = array<i32>} : memref<1x4x256xf32, #tpu.memory_space<vmem>>, vector<1x4x256xf32>,
    return
  }
  func.func @transform_0(%arg0: i32, %arg1: i32) -> (i32, i32, i32) {
    %c0_i32 = arith.constant 0 : i32
    %c0_i32_0 = arith.constant 0 : i32
    return %arg0, %c0_i32, %arg1 : i32, i32, i32
  }
  func.func @transform_1(%arg0: i32, %arg1: i32) -> (i32, i32) {
    %c0_i32 = arith.constant 0 : i32
    %c0_i32_0 = arith.constant 0 : i32
    %c0_i32_1 = arith.constant 0 : i32
    return %c0_i32, %c0_i32_0 : i32, i32
  }
  func.func @transform_2(%arg0: i32, %arg1: i32) -> (i32, i32) {
    %c0_i32 = arith.constant 0 : i32
    %c0_i32_0 = arith.constant 0 : i32
    %c0_i32_1 = arith.constant 0 : i32
    return %c0_i32, %c0_i32_0 : i32, i32
  }
  func.func @transform_3(%arg0: i32, %arg1: i32) -> (i32, i32, i32) {
    %c0_i32 = arith.constant 0 : i32
    %c0_i32_0 = arith.constant 0 : i32
    return %arg0, %c0_i32, %arg1 : i32, i32, i32
  }
}

</mosaic_0001>

<bundles_post_ra>
// kernel: tpu_custom_call.1
= control target key start
LH: loop header
LB: loop body
LE: loop exit
PB: predicated region body
PF: predicated region fallthrough
CT: control target
= control target key end

     0   :  { %8 = vsyncpa [#allocation3], 0  ;;  %s762_s0 = inlined_call_operand.hbm [shape: f32[2,4,256], index: 0, kind: input, shape index: {}]   ;;  %s763_s1 = inlined_call_operand.vmem [shape: f32[4,1], index: 1, kind: input, shape index: {}]   ;;  %s764_s2 = inlined_call_operand.vmem [shape: f32[4,1], index: 2, kind: input, shape index: {}]   ;;  %s765_s3 = inlined_call_operand.hbm [shape: f32[2,4,256], index: 3, kind: output, shape index: {}]  }
   0x1   :  { %10 = vsyncpa [#allocation3 + $0x1], 0 }
   0x2   :  { %11 = vsyncpa [#allocation4], 0 }
   0x3   :  { %13 = vsyncpa [#allocation4 + $0x1], 0  ;;  %s614_s12 = smov 0   ;;  %s616_s13 = smov 0  }
   0x4   :  { %s618_s14 = smov 0   ;;  %s620_s15 = smov 0  }
   0x5   :  { %s622_s16 = smov 0   ;;  %s624_s17 = smov 0  }
   0x6 LB: > { %s393_s18 = sadd.s32 4294967295, %s588_s17   ;;  %s394_s19 = sadd.s32 4294967294, %s588_s17   ;;  %s588_s17 = sphi %s624_s17, %s19_s17   ;;  %s584_s16 = sphi %s622_s16, %s777_s16   ;;  %s580_s15 = sphi %s620_s15, %s776_s15   ;;  %s576_s14 = sphi %s618_s14, %s775_s14   ;;  %s572_s13 = sphi %s616_s13, %s774_s13   ;;  %s568_s12 = sphi %s614_s12, %s773_s12  }
   0x7   : > { %s31_s20 = sadd.s32 1, %s584_s16  ;;  %s40_s21 = sadd.s32 1, %s576_s14 }
   0x8   : > { %p33_p0 = scmp.ge.s32.totalorder %s31_s20, 2  ;;  %p47_p1 = scmp.ne.s32.totalorder %s576_s14, %s572_s13 }
   0x9   : > { %p48_p2 = scmp.eq.s32.totalorder %s588_s17, 0  ;;  %p53_p3 = scmp.ne.s32.totalorder %s572_s13, %s568_s12 }
   0xa   : > { %s779_s20 = smov (%p33_p0, %s31_s20), 0  ;;  %p54_p5 = scmp.eq.s32.totalorder %s393_s18, 0 }
   0xb   : > { %p655_p4 = por %p48_p2, %p47_p1  ;;  %s35_s23 = ssub.s32 %s584_s16, %s779_s20 }
   0xc   : > { %p121_p6 = scmp.eq.s32.totalorder %s393_s18, 1  ;;  %p38_p7 = scmp.eq.s32.totalorder %s35_s23, 0 }
   0xd   : > { %p661_p8 = por %p54_p5, %p53_p3  ;;  %p127_p10 = scmp.eq.s32.totalorder %s394_s19, 1 }
   0xe   : > { %p665_p9 = por %p121_p6, %p47_p1  ;;  %p422_p13 = scmp.lt.s32.totalorder %s588_s17, 2 }
   0xf   : > { %s670_s26 = scalar_select %p38_p7, %s576_s14, %s40_s21  }
  0x10   : > { %p672_p11 = por %p127_p10, %p53_p3  ;;  %s153_s28 = sand.u32 1, %s576_s14  }
  0x11   : > { %s397_s29 = sshll.u32 %s153_s28, 3  ;;  %s408_s30 = sshll.u32 %s584_s16, 7 }
  0x12   : > { %s769_s27 = scalar_select %p672_p11, 1, 0 }
  0x13   : > { %s165_s6 = scalar_lea.hbm %s762_s0, %s408_s30  ;;  %s157_s7 = scalar_lea.vmem [#allocation2], %s397_s29 }
  0x14   : > { %s167_s8 = sshll.u32 %s157_s7, 4  ;;  %p685_p0 = pnand %p422_p13, %p655_p4  ;;  %s168_s8 = int_to_ptr.vmem [resolvable:$true] %s167_s8 }
  0x15   : > { %p400_p1 = scmp.ge.s32.totalorder %s588_s17, 1  ;;  %p172_p2 = scmp.lt.s32.totalorder %s588_s17, 3 }
  0x16   : > { %s154_s10 = scalar_lea.sflag [#allocation3], %s153_s28  ;;  %p482_p3 = pneg %p685_p0 }
  0x17   : > { %s493_s11 = scalar_lea.vmem %s168_s8, 128  ;;  %s590_s18 = smov [#allocation2]  }
  0x18   : > { %p494_p5 = scmp.ne.s32.totalorder %s168_s8, %s493_s11  ;;  %s498_s19 = sshll.u32 %s590_s18, 4  ;;  %s499_s19 = int_to_ptr.vmem [resolvable:$false] %s498_s19 }
  0x19   : > { %s500_s21 = scalar_lea.vmem %s499_s19, 256  ;;  %p501_p10 = scmp.lt.s32.totalorder %s168_s8, %s499_s19 }
  0x1a   : > { %p496_p6 = pnand %p494_p5, %p482_p3  ;;  %p502_p12 = scmp.lt.s32.totalorder %s500_s21, %s493_s11 }
  0x1c   : > { %p497_p7 = pneg %p496_p6  ;;  %p503_p4 = por %p502_p12, %p501_p10 }
  0x1e   : > { %p504_p13 = pnand %p503_p4, %p497_p7 }
  0x20   : > { %507 = shalt.err (!%p504_p13)
}
  0x21   : > { %417 = dma.hbm_to_vmem [thread:$0]  (!%p685_p0), %s165_s6, 128, %s168_s8, %s154_s10  }
  0x22   : > { %p173_p11 = pnand %p400_p1, %p172_p2 }
  0x23   : > { %s700_s22 = sand.u32 (!%p173_p11), 1, %s572_s13  }
  0x24   : > { %176 = sbr.rel (%p173_p11) target bundleno = 189 (0xbd), region = 32  ;;  %s401_s23 = sshll.u32 (!%p173_p11), %s700_s22, 3 }
  0x25   : > { %s179_s28 = scalar_lea.sflag (!%p173_p11), [#allocation3], %s700_s22  ;;  %s182_s29 = scalar_lea.vmem (!%p173_p11), [#allocation2], %s401_s23 }
  0x29   : > { %559 = dma.done.wait (%p661_p8), %s179_s28, 128  }
  0x2a   : > { %561 = vsyncadd (%p661_p8), %s179_s28, 4294967168  ;;  %v591_v0 = vmov 0   ;;  %v263_v1 = vld [vmem:[%s763_s1] sm:$0xf]  ;;  %vm211_vm0 = vcmask 1043456   ;;  %v271_v45 = vlaneseq  ;;  %s409_s24 = sshll.u32 %s580_s15, 7 }
  0x2b   : > { %474 = vset.pattern.permute.xlu0 %v591_v0  ;;  %v277_v2 = vld [vmem:[%s764_s2] sm:$0xf]  ;;  %v592_v43 = vmov 839922192   ;;  %s204_s7 = scalar_lea.vmem [#allocation5], %s401_s23  ;;  %s307_s11 = scalar_lea.hbm %s765_s3, %s409_s24 }
  0x2c   : > { %266 = vperm.xlu0 %474, %v263_v1   ;;  %v207_v3 = vld [vmem:[%s182_s29] sm:$0xff]  ;;  %v269_v44 = vunpack.c.l.s4 %v592_v43  ;;  %v272_v48 = vshrl.u32 %v271_v45, 7  ;;  %s309_s8 = sshll.u32 %s204_s7, 4  ;;  %s293_s18 = scalar_lea.sflag [#allocation4], %s700_s22  ;;  %s310_s8 = int_to_ptr.vmem [resolvable:$true] %s309_s8 }
  0x2d   : > { %v209_v4 = vcombine.high %v207_v3, %v207_v3  ;;  %v212_v5 = vsel %vm211_vm0, %v207_v3, 0.0  ;;  %s508_s19 = scalar_lea.vmem %s310_s8, 128  ;;  %s593_s21 = smov [#allocation5]  }
  0x2e   : > { %v213_v7 = vrot.slane %v212_v5, 4  ;;  %v270_v47 = vunpack.c.0.s8 %v269_v44  ;;  %p509_p8 = scmp.ne.s32.totalorder %s310_s8, %s508_s19  ;;  %s512_s15 = sshll.u32 %s593_s21, 4  ;;  %s513_s15 = int_to_ptr.vmem [resolvable:$false] %s512_s15 }
  0x2f   : > { %v219_v6 = vsel %vm211_vm0, %v209_v4, 0.0  ;;  %s514_s23 = scalar_lea.vmem %s513_s15, 256  ;;  %p515_p0 = scmp.lt.s32.totalorder %s310_s8, %s513_s15 }
  0x30   : > { %280 = vperm.xlu0 %474, %v277_v2   ;;  %v220_v8 = vrot.slane %v219_v6, 4  ;;  %v214_v9 = vadd.f32 %v213_v7, %v212_v5  ;;  %v273_v50 = vsub.s32 %v270_v47, %v272_v48  ;;  %p510_p11 = pnand %p509_p8, %p665_p9  ;;  %p516_p1 = scmp.lt.s32.totalorder %s514_s23, %s508_s19 }
  0x32   : > { %v221_v10 = vadd.f32 %v220_v8, %v219_v6  ;;  %v215_v11 = vrot.slane %v214_v9, 2  ;;  %p511_p12 = pneg %p510_p11  ;;  %p517_p2 = por %p516_p1, %p515_p0 }
  0x34   : > { %v222_v12 = vrot.slane %v221_v10, 2  ;;  %v216_v13 = vadd.f32 %v215_v11, %v214_v9  ;;  %p518_p3 = pnand %p517_p2, %p511_p12 }
  0x36   : > { %v223_v14 = vadd.f32 %v222_v12, %v221_v10  ;;  %v217_v15 = vrot.slane %v216_v13, 1 }
  0x38   : > { %v224_v16 = vrot.slane %v223_v14, 1  ;;  %v218_v17 = vadd.f32 %v217_v15, %v216_v13 }
  0x3a   : > { %v225_v18 = vadd.f32 %v224_v16, %v223_v14  ;;  %v227_v19 = vmul.f32 0.25, %v218_v17 }
  0x3c   : > { %v228_v20 = vmul.f32 0.25, %v225_v18 }
  0x3e   : > { %v231_v21 = vcombine.low %v227_v19, %v228_v20 }
  0x40   : > { %v233_v22 = vsub.f32 %v207_v3, %v231_v21 }
  0x42   : > { %v234_v23 = vmul.f32 %v233_v22, %v233_v22 }
  0x44   : > { %v236_v24 = vcombine.high %v234_v23, %v234_v23  ;;  %v238_v25 = vsel %vm211_vm0, %v234_v23, 0.0 }
  0x45   : > { %v239_v27 = vrot.slane %v238_v25, 4 }
  0x46   : > { %v245_v26 = vsel %vm211_vm0, %v236_v24, 0.0 }
  0x47   : > { %v246_v28 = vrot.slane %v245_v26, 4  ;;  %v240_v29 = vadd.f32 %v239_v27, %v238_v25 }
  0x49   : > { %v247_v30 = vadd.f32 %v246_v28, %v245_v26  ;;  %v241_v31 = vrot.slane %v240_v29, 2 }
  0x4b   : > { %v248_v32 = vrot.slane %v247_v30, 2  ;;  %v242_v33 = vadd.f32 %v241_v31, %v240_v29 }
  0x4d   : > { %v249_v34 = vadd.f32 %v248_v32, %v247_v30  ;;  %v243_v35 = vrot.slane %v242_v33, 1 }
  0x4f   : > { %v250_v36 = vrot.slane %v249_v34, 1  ;;  %v244_v37 = vadd.f32 %v243_v35, %v242_v33 }
  0x51   : > { %v251_v38 = vadd.f32 %v250_v36, %v249_v34  ;;  %v252_v39 = vmul.f32 0.25, %v244_v37 }
  0x53   : > { %v253_v40 = vmul.f32 0.25, %v251_v38  ;;  %v254_v41 = vadd.f32 1e-06, %v252_v39 }
  0x55   : > { %v255_v42 = vadd.f32 1e-06, %v253_v40  ;;  %476 = vrsqrt.f32 %v254_v41 }
  0x57   : > { %478 = vrsqrt.f32 %v255_v42 }
  0x62   : > { %v477_v46 = vpop.eup %476 }
  0x64   : > { %v479_v49 = vpop.eup %478 }
  0x65   : > { %v260_v51 = vcombine.low %v477_v46, %v479_v49 }
  0x67   : > { %v262_v53 = vmul.f32 %v260_v51, %v233_v22 }
  0xa7   : > { %v267_v52 = vpop.permute.xlu0 %266 }
  0xa8   : > { %v274_v54 = vrot.slane %v267_v52, %v273_v50 }
  0xaa   : > { %v276_v56 = vmul.f32 %v274_v54, %v262_v53 }
  0xab   : > { %v281_v55 = vpop.permute.xlu0 %280 }
  0xac   : > { %v288_v57 = vrot.slane %v281_v55, %v273_v50 }
  0xae   : > { %v290_v58 = vadd.f32 %v288_v57, %v276_v56 }
  0xb0   : > { %291 = vst [vmem:[%s204_s7] sm:$0xff] %v290_v58 }
  0xb1   : > { %521 = shalt.err (!%p518_p3)
}
  0xb2   : > { %s522_s28 = scalar_lea.hbm %s307_s11, 128  ;;  %s526_s30 = scalar_lea.hbm %s765_s3, 256 }
  0xb3   : > { %p523_p5 = scmp.ne.s32.totalorder %s307_s11, %s522_s28  ;;  %p527_p10 = scmp.lt.s32.totalorder %s307_s11, %s765_s3 }
  0xb4   : > { %p528_p4 = scmp.lt.s32.totalorder %s526_s30, %s522_s28 }
  0xb5   : > { %p524_p6 = pnand %p523_p5, %p665_p9 }
  0xb6   : > { %p529_p13 = por %p528_p4, %p527_p10 }
  0xb7   : > { %p525_p7 = pneg %p524_p6 }
  0xb9   : > { %p530_p8 = pnand %p529_p13, %p525_p7 }
  0xbb   : > { %533 = shalt.err (!%p530_p8)
}
  0xbc   : > { %412 = dma.vmem_to_hbm [thread:$0]  (%p665_p9), %s310_s8, 128, %s307_s11, %s293_s18  }
  0xbd PF: > { %s321_s6 = sand.u32 1, %s568_s12   ;;  %p771_p11 = scmp.ne.s32.totalorder %s769_s27, 0 }
  0xbe   : > { %p772_p12 = scmp.ge.s32.totalorder %s588_s17, 2  ;;  %s322_s24 = scalar_lea.sflag [#allocation4], %s321_s6 }
  0xc0   : > { %p419_p0 = pnand %p772_p12, %p771_p11 }
  0xc2   : > { %p420_p1 = pneg %p419_p0 }
  0xc4   : > { %563 = dma.done.wait (%p420_p1), %s322_s24, 128  }
  0xc5   : > { %565 = vsyncadd (%p420_p1), %s322_s24, 4294967168  ;;  %s19_s17 = sadd.s32 1, %s588_s17   ;;  %s773_s12 = smov %s572_s13 }
  0xc6   : > { %p16_p2 = scmp.ge.s32.totalorder %s19_s17, 4   ;;  %s774_s13 = smov %s576_s14 }
  0xc7   : > { %s775_s14 = smov %s670_s26  ;;  %s776_s15 = smov %s584_s16 }
  0xc8   : > { %s777_s16 = smov %s779_s20  ;;  %18 = sbr.rel (!%p16_p2) target bundleno = 6 (0x6), region = 77 }
  0xcd   :  { %327 = vsyncpa [#allocation3], 1 }
  0xce   :  { %329 = vsyncpa [#allocation3 + $0x1], 1 }
  0xcf   :  { %330 = vsyncpa [#allocation4], 1 }
  0xd0   :  { %332 = vsyncpa [#allocation4 + $0x1], 1 }

</bundles_post_ra>
